<compile_context>
chip_gen: v6e
topology: v6e:2x2x1
jax: 0.10.0
libtpu: 0.0.40
codegen_flags: <defaults>
</compile_context>

<pallas_src>
import numpy as np

import jax
import jax.numpy as jnp
from jax import lax
from jax.experimental import pallas as pl
from jax.experimental.pallas import tpu as pltpu

EPS = 1e-5


def resblock_kernel(x_ref, sdn_ref, sup_ref, b1_ref, b2_ref, r_ref,
                    g1_ref, be1_ref, g2_ref, be2_ref, out_ref):
    x = x_ref[...]                                # (N*H, W*C) f32, lane-dense

    def conv3x3(inp, band_ref):
        # Row taps h-1 / h+1 via constant shift matrices (H-boundary zeros are
        # baked into the matrices), stacked once along lanes, then one
        # K = 3*W*C matmul; the banded weight matrix encodes the W-direction
        # taps and their zero padding plus the channel contraction.
        prev = jnp.dot(sdn_ref[...], inp, preferred_element_type=jnp.float32)
        nxt = jnp.dot(sup_ref[...], inp, preferred_element_type=jnp.float32)
        a = jnp.concatenate([prev, inp, nxt], axis=1)        # (N*H, 3*W*C)
        return jnp.dot(a, band_ref[...], preferred_element_type=jnp.float32)

    def batchnorm(y, g_ref, be_ref):
        # Training-mode BN fused into a single scale/shift FMA.  r_ref is the
        # same-channel lane pattern pre-scaled by 1/(N*H*W), so one tiny
        # matmul both reduces each channel's lanes and re-broadcasts per lane.
        mean = jnp.dot(jnp.sum(y, axis=0, keepdims=True), r_ref[...],
                       preferred_element_type=jnp.float32)   # (1, W*C) E[x]
        ex2 = jnp.dot(jnp.sum(y * y, axis=0, keepdims=True), r_ref[...],
                      preferred_element_type=jnp.float32)    # (1, W*C) E[x^2]
        var = ex2 - mean * mean                              # biased variance
        scale = g_ref[...] * lax.rsqrt(var + EPS)            # (1, W*C)
        shift = be_ref[...] - mean * scale
        return y * scale + shift

    h1 = jnp.maximum(batchnorm(conv3x3(x, b1_ref), g1_ref, be1_ref), 0.0)
    y2 = batchnorm(conv3x3(h1, b2_ref), g2_ref, be2_ref)
    out_ref[...] = jnp.maximum(y2 + x, 0.0).astype(out_ref.dtype)


def _band_matrix(w_hwio, width):
    """(3,3,Cin,Cout) HWIO conv weights -> (3*W*Cin, W*Cout) banded matrix.

    band[(dy*W + w_in)*Cin + ci, w_out*Cout + co] = w[dy, w_in-w_out+1, ci, co]
    and zero outside the 3-tap band (implements the W-direction 'same' pad).
    """
    kh, kw, ci, co = w_hwio.shape
    w_in = np.arange(width)[None, :, None]
    w_out = np.arange(width)[None, None, :]
    dx = np.arange(kw)[:, None, None]
    sel = jnp.asarray((w_in == w_out + dx - 1).astype(np.float32))  # (kw,W,W)
    # Elementwise select + sum (exact in f32; avoids any matmul precision
    # downgrade in the wrapper).
    band = (sel[None, :, :, None, :, None]
            * w_hwio.astype(jnp.float32)[:, :, None, :, None, :]).sum(axis=1)
    return band.reshape(kh * width * ci, width * co)


def _shift_matrices(n, h):
    """Row-shift matrices on the (N*H, W*C) view; zero rows at H boundaries."""
    nh = n * h
    r = np.arange(nh)
    hh = r % h
    sdn = np.zeros((nh, nh), np.float32)          # row r <- row r-1 (tap h-1)
    sdn[r[hh > 0], r[hh > 0] - 1] = 1.0
    sup = np.zeros((nh, nh), np.float32)          # row r <- row r+1 (tap h+1)
    sup[r[hh < h - 1], r[hh < h - 1] + 1] = 1.0
    return jnp.asarray(sdn), jnp.asarray(sup)


def residual_block(x_nchw, w1, w2, g1, b1, g2, b2):
    n, c, h, w = x_nchw.shape
    nh, wc = n * h, w * c

    # NCHW -> lane-dense (N*H, W*C) working layout (flattened NHWC).
    x2 = jnp.transpose(x_nchw, (0, 2, 3, 1)).reshape(nh, wc).astype(jnp.float32)

    sdn, sup = _shift_matrices(n, h)
    b1m = _band_matrix(w1, w)
    b2m = _band_matrix(w2, w)

    # Same-channel lane pattern, pre-scaled by 1/(N*H*W), so the kernel's BN
    # matmuls yield per-channel means directly (broadcast per lane).
    lane = np.arange(wc)
    rmat = jnp.asarray(
        (lane[:, None] % c == lane[None, :] % c).astype(np.float32)
        / float(n * h * w))

    def per_lane(v):  # per-channel affine param -> (1, W*C) lane vector
        return jnp.tile(jnp.reshape(v, (-1,)).astype(jnp.float32), w).reshape(1, wc)

    out2 = pl.pallas_call(
        resblock_kernel,
        out_shape=jax.ShapeDtypeStruct((nh, wc), jnp.float32),
        in_specs=[pl.BlockSpec(memory_space=pltpu.MemorySpace.VMEM)] * 10,
        out_specs=pl.BlockSpec(memory_space=pltpu.MemorySpace.VMEM),
    )(x2, sdn, sup, b1m, b2m, rmat,
      per_lane(g1), per_lane(b1), per_lane(g2), per_lane(b2))

    return jnp.transpose(out2.reshape(n, h, w, c), (0, 3, 1, 2)).astype(x_nchw.dtype)


def reference_block(x_nchw, w1, w2, g1, b1, g2, b2):
    # Pure-JAX reference (XLA conv) for validation.
    x = jnp.transpose(x_nchw, (0, 2, 3, 1))
    dn = lax.conv_dimension_numbers(x.shape, w1.shape, ('NHWC', 'HWIO', 'NHWC'))

    def bn(y, g, b):
        m = jnp.mean(y, axis=(0, 1, 2), keepdims=True)
        v = jnp.mean((y - m) ** 2, axis=(0, 1, 2), keepdims=True)
        return (y - m) / jnp.sqrt(v + EPS) * g.reshape(1, 1, 1, -1) \
            + b.reshape(1, 1, 1, -1)

    hh = lax.conv_general_dilated(x, w1, (1, 1), 'SAME', dimension_numbers=dn)
    hh = jnp.maximum(bn(hh, g1, b1), 0.0)
    h2 = lax.conv_general_dilated(hh, w2, (1, 1), 'SAME', dimension_numbers=dn)
    out = jnp.maximum(bn(h2, g2, b2) + x, 0.0)
    return jnp.transpose(out, (0, 3, 1, 2))


if __name__ == "__main__":
    key = jax.random.PRNGKey(0)
    kx, kw1, kw2, kg1, kb1, kg2, kb2 = jax.random.split(key, 7)

    N, C, H, W = 2, 4, 16, 16  # small, consistent with num_channels=4

    x = jax.random.normal(kx, (N, C, H, W), jnp.float32)

    # conv3x3 weights in HWIO layout (KH, KW, Cin, Cout)
    fan_in = C * 3 * 3
    w1 = jax.random.normal(kw1, (3, 3, C, C), jnp.float32) / jnp.sqrt(fan_in)
    w2 = jax.random.normal(kw2, (3, 3, C, C), jnp.float32) / jnp.sqrt(fan_in)

    # BatchNorm affine params (gamma, beta)
    g1 = 1.0 + 0.1 * jax.random.normal(kg1, (1, C), jnp.float32)
    b1 = 0.1 * jax.random.normal(kb1, (1, C), jnp.float32)
    g2 = 1.0 + 0.1 * jax.random.normal(kg2, (1, C), jnp.float32)
    b2 = 0.1 * jax.random.normal(kb2, (1, C), jnp.float32)

    out = jax.block_until_ready(residual_block(x, w1, w2, g1, b1, g2, b2))
    ref = jax.block_until_ready(reference_block(x, w1, w2, g1, b1, g2, b2))

    assert out.shape == (N, C, H, W)
    assert jnp.allclose(out, ref, atol=1e-4, rtol=1e-4), \
        float(jnp.max(jnp.abs(out - ref)))

    print("KERNEL_OK")
</pallas_src>

<mosaic_0001>
module attributes {stable_mosaic.version = 11 : i64} {
  func.func @resblock_kernel(%arg0: memref<32x64xf32, #tpu.memory_space<vmem>>, %arg1: memref<32x32xf32, #tpu.memory_space<vmem>>, %arg2: memref<32x32xf32, #tpu.memory_space<vmem>>, %arg3: memref<192x64xf32, #tpu.memory_space<vmem>>, %arg4: memref<192x64xf32, #tpu.memory_space<vmem>>, %arg5: memref<64x64xf32, #tpu.memory_space<vmem>>, %arg6: memref<1x64xf32, #tpu.memory_space<vmem>>, %arg7: memref<1x64xf32, #tpu.memory_space<vmem>>, %arg8: memref<1x64xf32, #tpu.memory_space<vmem>>, %arg9: memref<1x64xf32, #tpu.memory_space<vmem>>, %arg10: memref<32x64xf32, #tpu.memory_space<vmem>>) attributes {dimension_semantics = [], scalar_prefetch = 0 : i64, scratch_operands = 0 : i64, tpu.core_type = #tpu.core_type<tc>} {
    %c0 = arith.constant 0 : index
    %c0_0 = arith.constant 0 : index
    %0 = vector.load %arg0[%c0, %c0_0] : memref<32x64xf32, #tpu.memory_space<vmem>>, vector<32x64xf32>
    %c0_1 = arith.constant 0 : index
    %c0_2 = arith.constant 0 : index
    %1 = vector.load %arg1[%c0_1, %c0_2] : memref<32x32xf32, #tpu.memory_space<vmem>>, vector<32x32xf32>
    %cst = arith.constant dense<0.000000e+00> : vector<32x64xf32>
    %2 = tpu.matmul %1, %0, %cst {dimension_numbers = #tpu.dot_dimension_numbers<[1], [0], [0], [1], [0, 0, 1, 1], [], []>} : vector<32x32xf32>, vector<32x64xf32>, vector<32x64xf32> -> vector<32x64xf32>
    %c0_3 = arith.constant 0 : index
    %c0_4 = arith.constant 0 : index
    %3 = vector.load %arg2[%c0_3, %c0_4] : memref<32x32xf32, #tpu.memory_space<vmem>>, vector<32x32xf32>
    %cst_5 = arith.constant dense<0.000000e+00> : vector<32x64xf32>
    %4 = tpu.matmul %3, %0, %cst_5 {dimension_numbers = #tpu.dot_dimension_numbers<[1], [0], [0], [1], [0, 0, 1, 1], [], []>} : vector<32x32xf32>, vector<32x64xf32>, vector<32x64xf32> -> vector<32x64xf32>
    %5 = tpu.concatenate %2, %0, %4 in 1 : vector<32x64xf32>, vector<32x64xf32>, vector<32x64xf32> -> vector<32x192xf32>
    %c0_6 = arith.constant 0 : index
    %c0_7 = arith.constant 0 : index
    %6 = vector.load %arg3[%c0_6, %c0_7] : memref<192x64xf32, #tpu.memory_space<vmem>>, vector<192x64xf32>
    %cst_8 = arith.constant dense<0.000000e+00> : vector<32x64xf32>
    %7 = tpu.matmul %5, %6, %cst_8 {dimension_numbers = #tpu.dot_dimension_numbers<[1], [0], [0], [1], [0, 0, 1, 1], [], []>} : vector<32x192xf32>, vector<192x64xf32>, vector<32x64xf32> -> vector<32x64xf32>
    %cst_9 = arith.constant dense<0.000000e+00> : vector<64xf32>
    %8 = vector.multi_reduction <add>, %7, %cst_9 [0] : vector<32x64xf32> to vector<64xf32>
    %9 = vector.shape_cast %8 : vector<64xf32> to vector<1x64xf32>
    %c0_10 = arith.constant 0 : index
    %c0_11 = arith.constant 0 : index
    %10 = vector.load %arg5[%c0_10, %c0_11] : memref<64x64xf32, #tpu.memory_space<vmem>>, vector<64x64xf32>
    %cst_12 = arith.constant dense<0.000000e+00> : vector<1x64xf32>
    %11 = tpu.matmul %9, %10, %cst_12 {dimension_numbers = #tpu.dot_dimension_numbers<[1], [0], [0], [1], [0, 0, 1, 1], [], []>} : vector<1x64xf32>, vector<64x64xf32>, vector<1x64xf32> -> vector<1x64xf32>
    %12 = arith.mulf %7, %7 : vector<32x64xf32>
    %cst_13 = arith.constant dense<0.000000e+00> : vector<64xf32>
    %13 = vector.multi_reduction <add>, %12, %cst_13 [0] : vector<32x64xf32> to vector<64xf32>
    %14 = vector.shape_cast %13 : vector<64xf32> to vector<1x64xf32>
    %c0_14 = arith.constant 0 : index
    %c0_15 = arith.constant 0 : index
    %15 = vector.load %arg5[%c0_14, %c0_15] : memref<64x64xf32, #tpu.memory_space<vmem>>, vector<64x64xf32>
    %cst_16 = arith.constant dense<0.000000e+00> : vector<1x64xf32>
    %16 = tpu.matmul %14, %15, %cst_16 {dimension_numbers = #tpu.dot_dimension_numbers<[1], [0], [0], [1], [0, 0, 1, 1], [], []>} : vector<1x64xf32>, vector<64x64xf32>, vector<1x64xf32> -> vector<1x64xf32>
    %17 = arith.mulf %11, %11 : vector<1x64xf32>
    %18 = arith.subf %16, %17 : vector<1x64xf32>
    %c0_17 = arith.constant 0 : index
    %c0_18 = arith.constant 0 : index
    %19 = vector.load %arg6[%c0_17, %c0_18] : memref<1x64xf32, #tpu.memory_space<vmem>>, vector<1x64xf32>
    %cst_19 = arith.constant 9.99999974E-6 : f32
    %20 = vector.broadcast %cst_19 : f32 to vector<1x64xf32>
    %21 = arith.addf %18, %20 : vector<1x64xf32>
    %22 = math.rsqrt %21 : vector<1x64xf32>
    %23 = arith.mulf %19, %22 : vector<1x64xf32>
    %c0_20 = arith.constant 0 : index
    %c0_21 = arith.constant 0 : index
    %24 = vector.load %arg7[%c0_20, %c0_21] : memref<1x64xf32, #tpu.memory_space<vmem>>, vector<1x64xf32>
    %25 = arith.mulf %11, %23 : vector<1x64xf32>
    %26 = arith.subf %24, %25 : vector<1x64xf32>
    %27 = vector.broadcast %23 : vector<1x64xf32> to vector<32x64xf32>
    %28 = arith.mulf %7, %27 : vector<32x64xf32>
    %29 = vector.broadcast %26 : vector<1x64xf32> to vector<32x64xf32>
    %30 = arith.addf %28, %29 : vector<32x64xf32>
    %cst_22 = arith.constant 0.000000e+00 : f32
    %31 = vector.broadcast %cst_22 : f32 to vector<32x64xf32>
    %32 = arith.maximumf %30, %31 : vector<32x64xf32>
    %c0_23 = arith.constant 0 : index
    %c0_24 = arith.constant 0 : index
    %33 = vector.load %arg1[%c0_23, %c0_24] : memref<32x32xf32, #tpu.memory_space<vmem>>, vector<32x32xf32>
    %cst_25 = arith.constant dense<0.000000e+00> : vector<32x64xf32>
    %34 = tpu.matmul %33, %32, %cst_25 {dimension_numbers = #tpu.dot_dimension_numbers<[1], [0], [0], [1], [0, 0, 1, 1], [], []>} : vector<32x32xf32>, vector<32x64xf32>, vector<32x64xf32> -> vector<32x64xf32>
    %c0_26 = arith.constant 0 : index
    %c0_27 = arith.constant 0 : index
    %35 = vector.load %arg2[%c0_26, %c0_27] : memref<32x32xf32, #tpu.memory_space<vmem>>, vector<32x32xf32>
    %cst_28 = arith.constant dense<0.000000e+00> : vector<32x64xf32>
    %36 = tpu.matmul %35, %32, %cst_28 {dimension_numbers = #tpu.dot_dimension_numbers<[1], [0], [0], [1], [0, 0, 1, 1], [], []>} : vector<32x32xf32>, vector<32x64xf32>, vector<32x64xf32> -> vector<32x64xf32>
    %37 = tpu.concatenate %34, %32, %36 in 1 : vector<32x64xf32>, vector<32x64xf32>, vector<32x64xf32> -> vector<32x192xf32>
    %c0_29 = arith.constant 0 : index
    %c0_30 = arith.constant 0 : index
    %38 = vector.load %arg4[%c0_29, %c0_30] : memref<192x64xf32, #tpu.memory_space<vmem>>, vector<192x64xf32>
    %cst_31 = arith.constant dense<0.000000e+00> : vector<32x64xf32>
    %39 = tpu.matmul %37, %38, %cst_31 {dimension_numbers = #tpu.dot_dimension_numbers<[1], [0], [0], [1], [0, 0, 1, 1], [], []>} : vector<32x192xf32>, vector<192x64xf32>, vector<32x64xf32> -> vector<32x64xf32>
    %cst_32 = arith.constant dense<0.000000e+00> : vector<64xf32>
    %40 = vector.multi_reduction <add>, %39, %cst_32 [0] : vector<32x64xf32> to vector<64xf32>
    %41 = vector.shape_cast %40 : vector<64xf32> to vector<1x64xf32>
    %c0_33 = arith.constant 0 : index
    %c0_34 = arith.constant 0 : index
    %42 = vector.load %arg5[%c0_33, %c0_34] : memref<64x64xf32, #tpu.memory_space<vmem>>, vector<64x64xf32>
    %cst_35 = arith.constant dense<0.000000e+00> : vector<1x64xf32>
    %43 = tpu.matmul %41, %42, %cst_35 {dimension_numbers = #tpu.dot_dimension_numbers<[1], [0], [0], [1], [0, 0, 1, 1], [], []>} : vector<1x64xf32>, vector<64x64xf32>, vector<1x64xf32> -> vector<1x64xf32>
    %44 = arith.mulf %39, %39 : vector<32x64xf32>
    %cst_36 = arith.constant dense<0.000000e+00> : vector<64xf32>
    %45 = vector.multi_reduction <add>, %44, %cst_36 [0] : vector<32x64xf32> to vector<64xf32>
    %46 = vector.shape_cast %45 : vector<64xf32> to vector<1x64xf32>
    %c0_37 = arith.constant 0 : index
    %c0_38 = arith.constant 0 : index
    %47 = vector.load %arg5[%c0_37, %c0_38] : memref<64x64xf32, #tpu.memory_space<vmem>>, vector<64x64xf32>
    %cst_39 = arith.constant dense<0.000000e+00> : vector<1x64xf32>
    %48 = tpu.matmul %46, %47, %cst_39 {dimension_numbers = #tpu.dot_dimension_numbers<[1], [0], [0], [1], [0, 0, 1, 1], [], []>} : vector<1x64xf32>, vector<64x64xf32>, vector<1x64xf32> -> vector<1x64xf32>
    %49 = arith.mulf %43, %43 : vector<1x64xf32>
    %50 = arith.subf %48, %49 : vector<1x64xf32>
    %c0_40 = arith.constant 0 : index
    %c0_41 = arith.constant 0 : index
    %51 = vector.load %arg8[%c0_40, %c0_41] : memref<1x64xf32, #tpu.memory_space<vmem>>, vector<1x64xf32>
    %cst_42 = arith.constant 9.99999974E-6 : f32
    %52 = vector.broadcast %cst_42 : f32 to vector<1x64xf32>
    %53 = arith.addf %50, %52 : vector<1x64xf32>
    %54 = math.rsqrt %53 : vector<1x64xf32>
    %55 = arith.mulf %51, %54 : vector<1x64xf32>
    %c0_43 = arith.constant 0 : index
    %c0_44 = arith.constant 0 : index
    %56 = vector.load %arg9[%c0_43, %c0_44] : memref<1x64xf32, #tpu.memory_space<vmem>>, vector<1x64xf32>
    %57 = arith.mulf %43, %55 : vector<1x64xf32>
    %58 = arith.subf %56, %57 : vector<1x64xf32>
    %59 = vector.broadcast %55 : vector<1x64xf32> to vector<32x64xf32>
    %60 = arith.mulf %39, %59 : vector<32x64xf32>
    %61 = vector.broadcast %58 : vector<1x64xf32> to vector<32x64xf32>
    %62 = arith.addf %60, %61 : vector<32x64xf32>
    %63 = arith.addf %62, %0 : vector<32x64xf32>
    %cst_45 = arith.constant 0.000000e+00 : f32
    %64 = vector.broadcast %cst_45 : f32 to vector<32x64xf32>
    %65 = arith.maximumf %63, %64 : vector<32x64xf32>
    %c0_46 = arith.constant 0 : index
    %c0_47 = arith.constant 0 : index
    %66 = vector.load %arg10[%c0_46, %c0_47] : memref<32x64xf32, #tpu.memory_space<vmem>>, vector<32x64xf32>
    tpu.vector_store %arg10[%c0_46, %c0_47], %65 {strides = array<i32>} : memref<32x64xf32, #tpu.memory_space<vmem>>, vector<32x64xf32>,
    return
  }
}

</mosaic_0001>

<bundles_post_ra>
// kernel: tpu_custom_call.1
= control target key start
LH: loop header
LB: loop body
LE: loop exit
PB: predicated region body
PF: predicated region fallthrough
CT: control target
= control target key end

     0   :  { %vm44_vm0 = vcmask 261120   ;;  %s1406_s19 = smov 64   ;;  %v1407_v5 = vmov 0.0   ;;  %s1998_s0 = inlined_call_operand.vmem [shape: f32[32,64], index: 0, kind: input, shape index: {}]   ;;  %s1999_s1 = inlined_call_operand.vmem [shape: f32[32,32], index: 1, kind: input, shape index: {}]   ;;  %s2000_s2 = inlined_call_operand.vmem [shape: f32[32,32], index: 2, kind: input, shape index: {}]   ;;  %s2001_s3 = inlined_call_operand.vmem [shape: f32[192,64], index: 3, kind: input, shape index: {}]   ;;  %s2002_s4 = inlined_call_operand.vmem [shape: f32[192,64], index: 4, kind: input, shape index: {}]   ;;  %s2003_s5 = inlined_call_operand.vmem [shape: f32[64,64], index: 5, kind: input, shape index: {}]   ;;  %s2004_s6 = inlined_call_operand.vmem [shape: f32[1,64], index: 6, kind: input, shape index: {}]   ;;  %s2005_s7 = inlined_call_operand.vmem [shape: f32[1,64], index: 7, kind: input, shape index: {}]   ;;  %s2006_s8 = inlined_call_operand.vmem [shape: f32[1,64], index: 8, kind: input, shape index: {}]   ;;  %s2007_s9 = inlined_call_operand.vmem [shape: f32[1,64], index: 9, kind: input, shape index: {}]   ;;  %s2008_s10 = inlined_call_operand.hbm [shape: f32[32,64], index: 10, kind: output, shape index: {}]  }
   0x1   :  { %v1470_v0 = vld [vmem:[%s1998_s0 + $0x18] sm:$0xff]  ;;  %v1475_v1 = vld [vmem:[%s1998_s0 + $0x10] sm:$0xff]  ;;  %v1481_v2 = vld [vmem:[%s1999_s1] sm:$0xff]  ;;  %300 = vmatprep.subr.mxu0 %v1407_v5 }
   0x2   :  { %1242 = vmatprep.subr.mxu1 %v1470_v0  ;;  %251 = vrot.lane.b32.xlu1 %v1475_v1, %s1406_s19  ;;  %v1489_v3 = vld [vmem:[%s1998_s0 + $0x8] sm:$0xff]  ;;  %v1494_v4 = vld [vmem:[%s1998_s0] sm:$0xff]  ;;  %v279_v6 = vld [vmem:[%s2001_s3 + $0x78] sm:$0xff] }
   0x3   :  { %1243 = vmatpush3.msra.mxu1 %v1470_v0  ;;  %1250 = vmatprep.mubr.msk.f32.mxu1 %vm44_vm0, %v1481_v2  ;;  %v1513_v7 = vld [vmem:[%s1999_s1 + $0x8] sm:$0xff]  ;;  %v1519_v8 = vld [vmem:[%s1999_s1 + $0x10] sm:$0xff]  ;;  %v1537_v10 = vld [vmem:[%s1999_s1 + $0x18] sm:$0xff] }
   0x4   :  { %1244 = vmatprep.subr.mxu1 %v1475_v1  ;;  %247 = vrot.lane.b32.xlu0 %v1494_v4, %s1406_s19  ;;  %v278_v9 = vld [vmem:[%s2001_s3 + $0x70] sm:$0xff] }
   0x5   :  { %1245 = vmatpush3.msra.mxu1 %v1475_v1  ;;  %301 = vmatpush1.msra.mxu0 %v279_v6 }
   0x6   :  { %1246 = vmatprep.subr.mxu1 %v1489_v3  ;;  %253 = vrot.lane.b32.xlu1 %v1470_v0, %s1406_s19 }
   0x7   :  { %1247 = vmatpush3.msra.mxu1 %v1489_v3  ;;  %302 = vmatprep.subr.mxu0 %v1407_v5 }
   0x8   :  { %1248 = vmatprep.subr.mxu1 %v1494_v4  ;;  %249 = vrot.lane.b32.xlu0 %v1489_v3, %s1406_s19 }
   0x9   :  { %1249 = vmatpush3.msra.mxu1 %v1494_v4 }
   0xa   :  { %1251 = vmatmul.mubr.msk.f32.vlgmr.msra.gmra.mxu1 %vm44_vm0, %v1513_v7  ;;  %1256 = vmatprep.subr.mxu1 %v1470_v0 }
   0xb   :  { %1257 = vmatpush3.msra.mxu1 %v1470_v0  ;;  %1253 = vmatprep.mubr.msk.f32.mxu1 %vm44_vm0, %v1519_v8 }
   0xc   :  { %15 = vsyncpa [#allocation3], 0  ;;  %1258 = vmatprep.subr.mxu1 %v1475_v1  ;;  %v1543_v11 = vld [vmem:[%s2000_s2] sm:$0xff]  ;;  %303 = vmatpush1.msra.mxu0 %v278_v9  ;;  %v277_v12 = vld [vmem:[%s2001_s3 + $0x68] sm:$0xff]  ;;  %vm259_vm1 = vcmask 523264   ;;  %vm1408_vm2 = vmmov 0  }
   0xd   :  { %1259 = vmatpush3.msra.mxu1 %v1475_v1  ;;  %304 = vmatprep.subr.mxu0 %v1407_v5  ;;  %v1559_v13 = vld [vmem:[%s2000_s2 + $0x8] sm:$0xff]  ;;  %v276_v14 = vld [vmem:[%s2001_s3 + $0x60] sm:$0xff]  ;;  %v1568_v15 = vld [vmem:[%s2000_s2 + $0x10] sm:$0xff] }
   0xe   :  { %1254 = vmatmul.mubr.msk.f32.gmra.mxu1 %vm44_vm0, %v1537_v10  ;;  %1260 = vmatprep.subr.mxu1 %v1489_v3  ;;  %v275_v16 = vld [vmem:[%s2001_s3 + $0x58] sm:$0xff]  ;;  %v274_v18 = vld [vmem:[%s2001_s3 + $0x50] sm:$0xff]  ;;  %v273_v19 = vld [vmem:[%s2001_s3 + $0x48] sm:$0xff] }
   0xf   :  { %1261 = vmatpush3.msra.mxu1 %v1489_v3  ;;  %1264 = vmatprep.mubr.msk.f32.mxu1 %vm44_vm0, %v1543_v11  ;;  %v1582_v17 = vld [vmem:[%s2000_s2 + $0x18] sm:$0xff]  ;;  %v272_v20 = vld [vmem:[%s2001_s3 + $0x40] sm:$0xff]  ;;  %v270_v22 = vld [vmem:[%s2001_s3 + $0x30] sm:$0xff] }
  0x10   :  { %1262 = vmatprep.subr.mxu1 %v1494_v4  ;;  %305 = vmatpush1.msra.mxu0 %v277_v12  ;;  %v271_v21 = vld [vmem:[%s2001_s3 + $0x38] sm:$0xff]  ;;  %v269_v23 = vld [vmem:[%s2001_s3 + $0x28] sm:$0xff]  ;;  %v268_v24 = vld [vmem:[%s2001_s3 + $0x20] sm:$0xff] }
  0x11   :  { %1263 = vmatpush3.msra.mxu1 %v1494_v4  ;;  %306 = vmatprep.subr.mxu0 %v1407_v5  ;;  %v267_v25 = vld [vmem:[%s2001_s3 + $0x18] sm:$0xff]  ;;  %v266_v26 = vld [vmem:[%s2001_s3 + $0x10] sm:$0xff]  ;;  %v265_v27 = vld [vmem:[%s2001_s3 + $0x8] sm:$0xff] }
  0x12   :  { %1265 = vmatmul.mubr.msk.f32.vlgmr.msra.gmra.mxu1 %vm44_vm0, %v1559_v13  ;;  %307 = vmatpush1.msra.mxu0 %v276_v14  ;;  %v264_v28 = vld [vmem:[%s2001_s3] sm:$0xff]  ;;  %v287_v29 = vld [vmem:[%s2001_s3 + $0xb8] sm:$0xff]  ;;  %v286_v30 = vld [vmem:[%s2001_s3 + $0xb0] sm:$0xff] }
  0x13   :  { %1267 = vmatprep.mubr.msk.f32.mxu1 %vm44_vm0, %v1568_v15  ;;  %308 = vmatprep.subr.mxu0 %v1407_v5  ;;  %v285_v31 = vld [vmem:[%s2001_s3 + $0xa8] sm:$0xff]  ;;  %v284_v32 = vld [vmem:[%s2001_s3 + $0xa0] sm:$0xff]  ;;  %v283_v33 = vld [vmem:[%s2001_s3 + $0x98] sm:$0xff] }
  0x14   :  { %309 = vmatpush1.msra.mxu0 %v275_v16  ;;  %1270 = vmatprep.subr.mxu1 %v1407_v5  ;;  %v282_v34 = vld [vmem:[%s2001_s3 + $0x90] sm:$0xff]  ;;  %v281_v35 = vld [vmem:[%s2001_s3 + $0x88] sm:$0xff]  ;;  %v280_v36 = vld [vmem:[%s2001_s3 + $0x80] sm:$0xff] }
  0x15   :  { %310 = vmatprep.subr.mxu0 %v1407_v5  ;;  %v1676_v53 = vld [vmem:[%s2003_s5 + $0x38] sm:$0xff]  ;;  %v1683_v54 = vld [vmem:[%s2003_s5 + $0x30] sm:$0xff]  ;;  %v1690_v55 = vld [vmem:[%s2003_s5 + $0x28] sm:$0xff] }
  0x16   :  { %1268 = vmatmul.mubr.msk.f32.gmra.mxu1 %vm44_vm0, %v1582_v17  ;;  %311 = vmatpush1.msra.mxu0 %v274_v18  ;;  %v1697_v56 = vld [vmem:[%s2003_s5 + $0x20] sm:$0xff]  ;;  %v1704_v57 = vld [vmem:[%s2003_s5 + $0x18] sm:$0xff]  ;;  %v1711_v58 = vld [vmem:[%s2003_s5 + $0x10] sm:$0xff] }
  0x17   :  { %312 = vmatprep.subr.mxu0 %v1407_v5  ;;  %1271 = vmatpush3.msra.mxu1 %v1676_v53  ;;  %v1718_v59 = vld [vmem:[%s2003_s5 + $0x8] sm:$0xff]  ;;  %v1725_v60 = vld [vmem:[%s2003_s5] sm:$0xff] }
  0x18   :  { %313 = vmatpush1.msra.mxu0 %v273_v19  ;;  %1272 = vmatprep.subr.mxu1 %v1407_v5 }
  0x19   :  { %314 = vmatprep.subr.mxu0 %v1407_v5  ;;  %1273 = vmatpush3.msra.mxu1 %v1683_v54 }
  0x1a   :  { %315 = vmatpush1.msra.mxu0 %v272_v20  ;;  %1274 = vmatprep.subr.mxu1 %v1407_v5 }
  0x1b   :  { %316 = vmatprep.subr.mxu0 %v1407_v5  ;;  %1275 = vmatpush3.msra.mxu1 %v1690_v55 }
  0x1c   :  { %317 = vmatpush1.msra.mxu0 %v271_v21  ;;  %1276 = vmatprep.subr.mxu1 %v1407_v5 }
  0x1d   :  { %318 = vmatprep.subr.mxu0 %v1407_v5  ;;  %1277 = vmatpush3.msra.mxu1 %v1697_v56 }
  0x1e   :  { %319 = vmatpush1.msra.mxu0 %v270_v22  ;;  %1278 = vmatprep.subr.mxu1 %v1407_v5 }
  0x1f   :  { %320 = vmatprep.subr.mxu0 %v1407_v5  ;;  %1279 = vmatpush3.msra.mxu1 %v1704_v57 }
  0x20   :  { %321 = vmatpush1.msra.mxu0 %v269_v23  ;;  %1280 = vmatprep.subr.mxu1 %v1407_v5 }
  0x21   :  { %322 = vmatprep.subr.mxu0 %v1407_v5  ;;  %1281 = vmatpush3.msra.mxu1 %v1711_v58 }
  0x22   :  { %323 = vmatpush1.msra.mxu0 %v268_v24  ;;  %1282 = vmatprep.subr.mxu1 %v1407_v5 }
  0x23   :  { %324 = vmatprep.subr.mxu0 %v1407_v5  ;;  %1283 = vmatpush3.msra.mxu1 %v1718_v59 }
  0x24   :  { %325 = vmatpush1.msra.mxu0 %v267_v25  ;;  %1284 = vmatprep.subr.mxu1 %v1407_v5 }
  0x25   :  { %326 = vmatprep.subr.mxu0 %v1407_v5  ;;  %1285 = vmatpush3.msra.mxu1 %v1725_v60 }
  0x26   :  { %327 = vmatpush1.msra.mxu0 %v266_v26  ;;  %1286 = vmatprep.mubr.msk.f32.mxu1 %vm1408_vm2, %v1407_v5 }
  0x27   :  { %328 = vmatprep.subr.mxu0 %v1407_v5  ;;  %1289 = vmatprep.subr.mxu1 %v1407_v5 }
  0x28   :  { %329 = vmatpush1.msra.mxu0 %v265_v27 }
  0x29   :  { %330 = vmatprep.subr.mxu0 %v1407_v5 }
  0x2a   :  { %331 = vmatpush1.msra.mxu0 %v264_v28 }
  0x2b   :  { %348 = vmatprep.subr.mxu0 %v1407_v5 }
  0x2c   :  { %349 = vmatpush2.msra.mxu0 %v287_v29 }
  0x2d   :  { %350 = vmatprep.subr.mxu0 %v1407_v5 }
  0x2e   :  { %351 = vmatpush2.msra.mxu0 %v286_v30 }
  0x2f   :  { %352 = vmatprep.subr.mxu0 %v1407_v5 }
  0x30   :  { %353 = vmatpush2.msra.mxu0 %v285_v31 }
  0x31   :  { %354 = vmatprep.subr.mxu0 %v1407_v5 }
  0x32   :  { %355 = vmatpush2.msra.mxu0 %v284_v32 }
  0x33   :  { %356 = vmatprep.subr.mxu0 %v1407_v5 }
  0x34   :  { %357 = vmatpush2.msra.mxu0 %v283_v33 }
  0x35   :  { %358 = vmatprep.subr.mxu0 %v1407_v5 }
  0x36   :  { %359 = vmatpush2.msra.mxu0 %v282_v34 }
  0x37   :  { %360 = vmatprep.subr.mxu0 %v1407_v5 }
  0x38   :  { %361 = vmatpush2.msra.mxu0 %v281_v35 }
  0x39   :  { %362 = vmatprep.subr.mxu0 %v1407_v5 }
  0x3a   :  { %363 = vmatpush2.msra.mxu0 %v280_v36 }
  0x3b   :  { %828 = vmatprep.subr.mxu0 %v1407_v5 }
  0x74   :  { %v252_v47 = vpop.permute.xlu1 %251 }
  0x76   :  { %v248_v40 = vpop.permute.xlu0 %247 }
  0x78   :  { %v254_v51 = vpop.permute.xlu1 %253 }
  0x7a   :  { %v250_v45 = vpop.permute.xlu0 %249 }
  0xca   :  { %v1252_v37 = vpop.f32.mrf.mxu1 }
  0xcb   :  { %v261_v49 = vsel %vm259_vm1, %v1252_v37, %v250_v45 }
  0xcc   :  { %v123_v38 = vpop.f32.mrf.mxu1 }
  0xcd   :  { %v260_v44 = vsel %vm259_vm1, %v123_v38, %v248_v40 }
  0xce   :  { %v1255_v39 = vpop.f32.mrf.mxu1 }
  0xcf   :  { %v263_v52 = vsel %vm259_vm1, %v1255_v39, %v254_v51 }
  0xd0   :  { %v133_v41 = vpop.f32.mrf.mxu1 }
  0xd1   :  { %v262_v50 = vsel %vm259_vm1, %v133_v41, %v252_v47 }
  0xd2   :  { %v1266_v42 = vpop.f32.mrf.mxu1 }
  0xd4   :  { %v224_v43 = vpop.f32.mrf.mxu1 }
  0xd5   :  { %1154 = vmatprep.mubr.msk.f32.mxu0 %vm259_vm1, %v224_v43 }
  0xd6   :  { %365 = vmatmul.mubr.f32.vlgmr.msra.gmra.mxu0 %v260_v44  ;;  %v1269_v46 = vpop.f32.mrf.mxu1 }
  0xd7   :  { %1155 = vmatprep.mubr.msk.f32.mxu0 %vm259_vm1, %v1266_v42 }
  0xd8   :  { %v234_v48 = vpop.f32.mrf.mxu1 }
  0xda   :  { %370 = vmatmul.mubr.f32.gmra.mxu0 %v261_v49 }
  0xdb   :  { %1156 = vmatprep.mubr.msk.f32.mxu0 %vm259_vm1, %v234_v48 }
  0xde   :  { %375 = vmatmul.mubr.f32.gmra.mxu0 %v262_v50 }
  0xdf   :  { %1157 = vmatprep.mubr.msk.f32.mxu0 %vm259_vm1, %v1269_v46 }
  0xe2   :  { %380 = vmatmul.mubr.f32.gmra.mxu0 %v263_v52 }
 0x196   :  { %v1731_v61 = vpop.f32.mrf.mxu0 }
 0x197   :  { %v385_v16 = vsel %vm259_vm1, %v1731_v61, 0.0  ;;  %v479_v18 = vmul.f32 %v1731_v61, %v1731_v61 }
 0x198   :  { %v368_v62 = vpop.f32.mrf.mxu0 }
 0x199   :  { %v483_v26 = vsel %vm259_vm1, %v479_v18, 0.0 }
 0x19a   :  { %v1733_v63 = vpop.f32.mrf.mxu0 }
 0x19b   :  { %v386_v9 = vsel %vm259_vm1, %v1733_v63, 0.0  ;;  %v480_v12 = vmul.f32 %v1733_v63, %v1733_v63 }
 0x19c   :  { %v373_v6 = vpop.f32.mrf.mxu0  ;;  %v387_v21 = vadd.f32 %v386_v9, %v385_v16  ;;  %v579_v9 = vlaneseq  ;;  %v571_v16 = vld [vmem:[%s2004_s6] sm:$0x1] }
 0x19d   :  { %v484_v23 = vsel %vm259_vm1, %v480_v12, 0.0 }
 0x19e   :  { %v1739_v14 = vpop.f32.mrf.mxu0  ;;  %v485_v30 = vadd.f32 %v484_v23, %v483_v26  ;;  %v580_v12 = vshrl.u32 %v579_v9, 7  ;;  %v807_v23 = vld [vmem:[%s2002_s4 + $0x78] sm:$0xff] }
 0x19f   :  { %v388_v19 = vsel %vm259_vm1, %v1739_v14, 0.0  ;;  %v481_v20 = vmul.f32 %v1739_v14, %v1739_v14  ;;  %829 = vmatpush1.msra.mxu0 %v807_v23 }
 0x1a0   :  { %v378_v22 = vpop.f32.mrf.mxu0  ;;  %v389_v24 = vadd.f32 %v388_v19, %v387_v21  ;;  %v1783_v18 = vsub.s32 0, %v580_v12  ;;  %830 = vmatprep.subr.mxu0 %v1407_v5 }
 0x1a1   :  { %v486_v27 = vsel %vm259_vm1, %v481_v20, 0.0 }
 0x1a2   :  { %v1750_v25 = vpop.f32.mrf.mxu0  ;;  %v487_v34 = vadd.f32 %v486_v27, %v485_v30 }
 0x1a3   :  { %v390_v28 = vsel %vm259_vm1, %v1750_v25, 0.0  ;;  %v482_v29 = vmul.f32 %v1750_v25, %v1750_v25 }
 0x1a4   :  { %v391_v31 = vadd.f32 %v390_v28, %v389_v24  ;;  %v383_v32 = vpop.f32.mrf.mxu0  ;;  %v806_v24 = vld [vmem:[%s2002_s4 + $0x70] sm:$0xff]  ;;  %v805_v28 = vld [vmem:[%s2002_s4 + $0x68] sm:$0xff] }
 0x1a5   :  { %v488_v33 = vsel %vm259_vm1, %v482_v29, 0.0  ;;  %831 = vmatpush1.msra.mxu0 %v806_v24 }
 0x1a6   :  { %v392_v35 = vrot.slane %v391_v31, 4  ;;  %v489_v37 = vadd.f32 %v488_v33, %v487_v34  ;;  %832 = vmatprep.subr.mxu0 %v1407_v5 }
 0x1a7   :  { %833 = vmatpush1.msra.mxu0 %v805_v28 }
 0x1a8   :  { %v393_v36 = vadd.f32 %v392_v35, %v391_v31  ;;  %v490_v40 = vrot.slane %v489_v37, 4  ;;  %834 = vmatprep.subr.mxu0 %v1407_v5 }
 0x1aa   :  { %v394_v38 = vrot.slane %v393_v36, 2  ;;  %v491_v43 = vadd.f32 %v490_v40, %v489_v37  ;;  %v801_v40 = vld [vmem:[%s2002_s4 + $0x48] sm:$0xff] }
 0x1ac   :  { %v395_v39 = vadd.f32 %v394_v38, %v393_v36  ;;  %v492_v44 = vrot.slane %v491_v43, 2 }
 0x1ae   :  { %v396_v41 = vrot.slane %v395_v39, 1  ;;  %v493_v45 = vadd.f32 %v492_v44, %v491_v43  ;;  %v815_v43 = vld [vmem:[%s2002_s4 + $0xb8] sm:$0xff]  ;;  %v814_v44 = vld [vmem:[%s2002_s4 + $0xb0] sm:$0xff] }
 0x1b0   :  { %v397_v42 = vadd.f32 %v396_v41, %v395_v39  ;;  %v494_v46 = vrot.slane %v493_v45, 1  ;;  %v802_v39 = vld [vmem:[%s2002_s4 + $0x50] sm:$0xff]  ;;  %v800_v41 = vld [vmem:[%s2002_s4 + $0x40] sm:$0xff] }
 0x1b2   :  { %1287 = vmatmul.mubr.msk.f32.vlgmr.msra.gmra.mxu1 %vm259_vm1, %v397_v42  ;;  %v495_v47 = vadd.f32 %v494_v46, %v493_v45  ;;  %v792_v42 = vld [vmem:[%s2002_s4] sm:$0xff]  ;;  %v813_v45 = vld [vmem:[%s2002_s4 + $0xa8] sm:$0xff] }
 0x1b3   :  { %1290 = vmatpush3.msra.mxu1 %v1676_v53  ;;  %1305 = vmatprep.mubr.msk.f32.mxu1 %vm1408_vm2, %v1407_v5  ;;  %v812_v46 = vld [vmem:[%s2002_s4 + $0xa0] sm:$0xff] }
 0x1b4   :  { %1291 = vmatprep.subr.mxu1 %v1407_v5 }
 0x1b5   :  { %1292 = vmatpush3.msra.mxu1 %v1683_v54 }
 0x1b6   :  { %1293 = vmatprep.subr.mxu1 %v1407_v5 }
 0x1b7   :  { %1294 = vmatpush3.msra.mxu1 %v1690_v55 }
 0x1b8   :  { %1295 = vmatprep.subr.mxu1 %v1407_v5 }
 0x1b9   :  { %1296 = vmatpush3.msra.mxu1 %v1697_v56 }
 0x1ba   :  { %1297 = vmatprep.subr.mxu1 %v1407_v5 }
 0x1bb   :  { %1298 = vmatpush3.msra.mxu1 %v1704_v57 }
 0x1bc   :  { %1299 = vmatprep.subr.mxu1 %v1407_v5 }
 0x1bd   :  { %1300 = vmatpush3.msra.mxu1 %v1711_v58 }
 0x1be   :  { %1301 = vmatprep.subr.mxu1 %v1407_v5 }
 0x1bf   :  { %1302 = vmatpush3.msra.mxu1 %v1718_v59 }
 0x1c0   :  { %1303 = vmatprep.subr.mxu1 %v1407_v5 }
 0x1c1   :  { %1304 = vmatpush3.msra.mxu1 %v1725_v60 }
 0x1c2   :  { %1306 = vmatmul.mubr.msk.f32.vlgmr.msra.gmra.mxu1 %vm259_vm1, %v495_v47  ;;  %v811_v47 = vld [vmem:[%s2002_s4 + $0x98] sm:$0xff] }
 0x1c3   :  { %1316 = vmatprep.mubr.msk.f32.mxu1 %vm44_vm0, %v1481_v2  ;;  %v575_v2 = vld [vmem:[%s2005_s7] sm:$0x1] }
 0x272   :  { %v475_v48 = vpop.f32.mrf.mxu1 }
 0x273   :  { %v569_v50 = vmul.f32 %v475_v48, %v475_v48 }
 0x274   :  { %v1288_v49 = vpop.f32.mrf.mxu1 }
 0x275   :  { %v809_v49 = vld [vmem:[%s2002_s4 + $0x88] sm:$0xff] }
 0x282   :  { %v565_v51 = vpop.f32.mrf.mxu1 }
 0x283   :  { %v570_v52 = vsub.f32 %v565_v51, %v569_v50  ;;  %v808_v50 = vld [vmem:[%s2002_s4 + $0x80] sm:$0xff] }
 0x284   :  { %v1307_v62 = vpop.f32.mrf.mxu1 }
 0x285   :  { %v572_v6 = vadd.f32 1e-05, %v570_v52 }
 0x287   :  { %1380 = vrsqrt.f32 %v572_v6 }
 0x294   :  { %v1381_v19 = vpop.eup %1380 }
 0x295   :  { %v574_v20 = vmul.f32 %v1381_v19, %v571_v16 }
 0x297   :  { %v576_v21 = vmul.f32 %v574_v20, %v475_v48  ;;  %v582_v22 = vrot.slane %v574_v20, %v1783_v18  ;;  %v810_v48 = vld [vmem:[%s2002_s4 + $0x90] sm:$0xff] }
 0x299   :  { %v577_v26 = vsub.f32 %v575_v2, %v576_v21  ;;  %v587_v27 = vmul.f32 %v582_v22, %v1750_v25  ;;  %v585_v30 = vmul.f32 %v582_v22, %v1733_v63  ;;  %v584_v31 = vmul.f32 %v582_v22, %v1731_v61  ;;  %v804_v25 = vld [vmem:[%s2002_s4 + $0x60] sm:$0xff]  ;;  %v803_v61 = vld [vmem:[%s2002_s4 + $0x58] sm:$0xff] }
 0x29a   :  { %v586_v32 = vmul.f32 %v582_v22, %v1739_v14  ;;  %835 = vmatpush1.msra.mxu0 %v804_v25 }
 0x29b   :  { %v592_v29 = vrot.slane %v577_v26, %v1783_v18  ;;  %836 = vmatprep.subr.mxu0 %v1407_v5 }
 0x29c   :  { %837 = vmatpush1.msra.mxu0 %v803_v61 }
 0x29d   :  { %v597_v33 = vadd.f32 %v592_v29, %v587_v27  ;;  %v595_v34 = vadd.f32 %v592_v29, %v585_v30  ;;  %v594_v35 = vadd.f32 %v592_v29, %v584_v31  ;;  %v596_v36 = vadd.f32 %v592_v29, %v586_v32  ;;  %838 = vmatprep.subr.mxu0 %v1407_v5 }
 0x29e   :  { %839 = vmatpush1.msra.mxu0 %v802_v39 }
 0x29f   :  { %v601_v37 = vmax.f32 %v597_v33, 0.0  ;;  %v599_v63 = vmax.f32 %v595_v34, 0.0  ;;  %v598_v38 = vmax.f32 %v594_v35, 0.0  ;;  %v600_v14 = vmax.f32 %v596_v36, 0.0  ;;  %840 = vmatprep.subr.mxu0 %v1407_v5 }
 0x2a0   :  { %841 = vmatpush1.msra.mxu0 %v801_v40 }
 0x2a1   :  { %1308 = vmatprep.subr.mxu1 %v601_v37  ;;  %778 = vrot.lane.b32.xlu1 %v599_v63, %s1406_s19 }
 0x2a2   :  { %776 = vrot.lane.b32.xlu0 %v598_v38, %s1406_s19  ;;  %1309 = vmatpush3.msra.mxu1 %v601_v37 }
 0x2a3   :  { %1310 = vmatprep.subr.mxu1 %v600_v14  ;;  %842 = vmatprep.subr.mxu0 %v1407_v5 }
 0x2a4   :  { %1311 = vmatpush3.msra.mxu1 %v600_v14  ;;  %843 = vmatpush1.msra.mxu0 %v800_v41 }
 0x2a5   :  { %782 = vrot.lane.b32.xlu1 %v601_v37, %s1406_s19  ;;  %1312 = vmatprep.subr.mxu1 %v599_v63 }
 0x2a6   :  { %780 = vrot.lane.b32.xlu0 %v600_v14, %s1406_s19  ;;  %1313 = vmatpush3.msra.mxu1 %v599_v63 }
 0x2a7   :  { %1314 = vmatprep.subr.mxu1 %v598_v38  ;;  %844 = vmatprep.subr.mxu0 %v1407_v5 }
 0x2a8   :  { %1315 = vmatpush3.msra.mxu1 %v598_v38 }
 0x2a9   :  { %1317 = vmatmul.mubr.msk.f32.vlgmr.msra.gmra.mxu1 %vm44_vm0, %v1513_v7  ;;  %1322 = vmatprep.subr.mxu1 %v601_v37  ;;  %v799_v7 = vld [vmem:[%s2002_s4 + $0x38] sm:$0xff] }
 0x2aa   :  { %1323 = vmatpush3.msra.mxu1 %v601_v37  ;;  %1319 = vmatprep.mubr.msk.f32.mxu1 %vm44_vm0, %v1519_v8  ;;  %v798_v8 = vld [vmem:[%s2002_s4 + $0x30] sm:$0xff] }
 0x2ab   :  { %1324 = vmatprep.subr.mxu1 %v600_v14  ;;  %845 = vmatpush1.msra.mxu0 %v799_v7 }
 0x2ac   :  { %1325 = vmatpush3.msra.mxu1 %v600_v14  ;;  %846 = vmatprep.subr.mxu0 %v1407_v5 }
 0x2ad   :  { %1320 = vmatmul.mubr.msk.f32.gmra.mxu1 %vm44_vm0, %v1537_v10  ;;  %1326 = vmatprep.subr.mxu1 %v599_v63  ;;  %v797_v10 = vld [vmem:[%s2002_s4 + $0x28] sm:$0xff] }
 0x2ae   :  { %1327 = vmatpush3.msra.mxu1 %v599_v63  ;;  %1330 = vmatprep.mubr.msk.f32.mxu1 %vm44_vm0, %v1543_v11  ;;  %v796_v11 = vld [vmem:[%s2002_s4 + $0x20] sm:$0xff] }
 0x2af   :  { %1328 = vmatprep.subr.mxu1 %v598_v38  ;;  %847 = vmatpush1.msra.mxu0 %v798_v8 }
 0x2b0   :  { %1329 = vmatpush3.msra.mxu1 %v598_v38  ;;  %848 = vmatprep.subr.mxu0 %v1407_v5 }
 0x2b1   :  { %1331 = vmatmul.mubr.msk.f32.vlgmr.msra.gmra.mxu1 %vm44_vm0, %v1559_v13  ;;  %1336 = vmatprep.subr.mxu1 %v1407_v5  ;;  %v795_v13 = vld [vmem:[%s2002_s4 + $0x18] sm:$0xff] }
 0x2b2   :  { %1333 = vmatprep.mubr.msk.f32.mxu1 %vm44_vm0, %v1568_v15  ;;  %1337 = vmatpush3.msra.mxu1 %v1676_v53  ;;  %v794_v15 = vld [vmem:[%s2002_s4 + $0x10] sm:$0xff] }
 0x2b3   :  { %849 = vmatpush1.msra.mxu0 %v797_v10  ;;  %1338 = vmatprep.subr.mxu1 %v1407_v5 }
 0x2b4   :  { %850 = vmatprep.subr.mxu0 %v1407_v5  ;;  %1339 = vmatpush3.msra.mxu1 %v1683_v54 }
 0x2b5   :  { %1334 = vmatmul.mubr.msk.f32.gmra.mxu1 %vm44_vm0, %v1582_v17  ;;  %851 = vmatpush1.msra.mxu0 %v796_v11  ;;  %v793_v17 = vld [vmem:[%s2002_s4 + $0x8] sm:$0xff] }
 0x2b6   :  { %852 = vmatprep.subr.mxu0 %v1407_v5  ;;  %1340 = vmatprep.subr.mxu1 %v1407_v5 }
 0x2b7   :  { %853 = vmatpush1.msra.mxu0 %v795_v13  ;;  %1341 = vmatpush3.msra.mxu1 %v1690_v55 }
 0x2b8   :  { %854 = vmatprep.subr.mxu0 %v1407_v5  ;;  %1342 = vmatprep.subr.mxu1 %v1407_v5 }
 0x2b9   :  { %855 = vmatpush1.msra.mxu0 %v794_v15  ;;  %1343 = vmatpush3.msra.mxu1 %v1697_v56 }
 0x2ba   :  { %856 = vmatprep.subr.mxu0 %v1407_v5  ;;  %1344 = vmatprep.subr.mxu1 %v1407_v5 }
 0x2bb   :  { %857 = vmatpush1.msra.mxu0 %v793_v17  ;;  %1345 = vmatpush3.msra.mxu1 %v1704_v57 }
 0x2bc   :  { %858 = vmatprep.subr.mxu0 %v1407_v5  ;;  %1346 = vmatprep.subr.mxu1 %v1407_v5 }
 0x2bd   :  { %859 = vmatpush1.msra.mxu0 %v792_v42  ;;  %1347 = vmatpush3.msra.mxu1 %v1711_v58 }
 0x2be   :  { %876 = vmatprep.subr.mxu0 %v1407_v5  ;;  %1348 = vmatprep.subr.mxu1 %v1407_v5 }
 0x2bf   :  { %877 = vmatpush2.msra.mxu0 %v815_v43  ;;  %1349 = vmatpush3.msra.mxu1 %v1718_v59 }
 0x2c0   :  { %878 = vmatprep.subr.mxu0 %v1407_v5  ;;  %1350 = vmatprep.subr.mxu1 %v1407_v5 }
 0x2c1   :  { %879 = vmatpush2.msra.mxu0 %v814_v44  ;;  %1351 = vmatpush3.msra.mxu1 %v1725_v60 }
 0x2c2   :  { %880 = vmatprep.subr.mxu0 %v1407_v5  ;;  %1352 = vmatprep.mubr.msk.f32.mxu1 %vm1408_vm2, %v1407_v5 }
 0x2c3   :  { %1355 = vmatprep.subr.mxu1 %v1407_v5  ;;  %881 = vmatpush2.msra.mxu0 %v813_v45 }
 0x2c4   :  { %882 = vmatprep.subr.mxu0 %v1407_v5 }
 0x2c5   :  { %883 = vmatpush2.msra.mxu0 %v812_v46 }
 0x2c6   :  { %884 = vmatprep.subr.mxu0 %v1407_v5 }
 0x2c7   :  { %885 = vmatpush2.msra.mxu0 %v811_v47 }
 0x2c8   :  { %886 = vmatprep.subr.mxu0 %v1407_v5 }
 0x2c9   :  { %887 = vmatpush2.msra.mxu0 %v810_v48 }
 0x2ca   :  { %888 = vmatprep.subr.mxu0 %v1407_v5 }
 0x2cb   :  { %889 = vmatpush2.msra.mxu0 %v809_v49 }
 0x2cc   :  { %890 = vmatprep.subr.mxu0 %v1407_v5 }
 0x2cd   :  { %891 = vmatpush2.msra.mxu0 %v808_v50 }
 0x313   :  { %v779_v2 = vpop.permute.xlu1 %778 }
 0x314   :  { %v777_v12 = vpop.permute.xlu0 %776 }
 0x317   :  { %v783_v26 = vpop.permute.xlu1 %782 }
 0x318   :  { %v781_v23 = vpop.permute.xlu0 %780 }
 0x369   :  { %v1318_v51 = vpop.f32.mrf.mxu1 }
 0x36a   :  { %v789_v22 = vsel %vm259_vm1, %v1318_v51, %v779_v2 }
 0x36b   :  { %v668_v52 = vpop.f32.mrf.mxu1 }
 0x36c   :  { %v788_v19 = vsel %vm259_vm1, %v668_v52, %v777_v12 }
 0x36d   :  { %v1321_v62 = vpop.f32.mrf.mxu1 }
 0x36e   :  { %v791_v27 = vsel %vm259_vm1, %v1321_v62, %v783_v26 }
 0x36f   :  { %v678_v6 = vpop.f32.mrf.mxu1 }
 0x370   :  { %v790_v24 = vsel %vm259_vm1, %v678_v6, %v781_v23 }
 0x371   :  { %v1332_v9 = vpop.f32.mrf.mxu1 }
 0x373   :  { %v753_v16 = vpop.f32.mrf.mxu1 }
 0x374   :  { %1168 = vmatprep.mubr.msk.f32.mxu0 %vm259_vm1, %v753_v16 }
 0x375   :  { %893 = vmatmul.mubr.f32.vlgmr.msra.gmra.mxu0 %v788_v19  ;;  %v1335_v20 = vpop.f32.mrf.mxu1 }
 0x376   :  { %1169 = vmatprep.mubr.msk.f32.mxu0 %vm259_vm1, %v1332_v9 }
 0x377   :  { %v763_v21 = vpop.f32.mrf.mxu1 }
 0x379   :  { %898 = vmatmul.mubr.f32.gmra.mxu0 %v789_v22 }
 0x37a   :  { %1170 = vmatprep.mubr.msk.f32.mxu0 %vm259_vm1, %v763_v21 }
 0x37d   :  { %903 = vmatmul.mubr.f32.gmra.mxu0 %v790_v24 }
 0x37e   :  { %1171 = vmatprep.mubr.msk.f32.mxu0 %vm259_vm1, %v1335_v20 }
 0x381   :  { %908 = vmatmul.mubr.f32.gmra.mxu0 %v791_v27 }
 0x435   :  { %v1934_v28 = vpop.f32.mrf.mxu0 }
 0x436   :  { %v913_v34 = vsel %vm259_vm1, %v1934_v28, 0.0  ;;  %v999_v35 = vmul.f32 %v1934_v28, %v1934_v28 }
 0x437   :  { %v896_v29 = vpop.f32.mrf.mxu0 }
 0x438   :  { %v1003_v40 = vsel %vm259_vm1, %v999_v35, 0.0 }
 0x439   :  { %v1936_v30 = vpop.f32.mrf.mxu0 }
 0x43a   :  { %v914_v32 = vsel %vm259_vm1, %v1936_v30, 0.0  ;;  %v1000_v25 = vmul.f32 %v1936_v30, %v1936_v30 }
 0x43b   :  { %v901_v31 = vpop.f32.mrf.mxu0  ;;  %v915_v63 = vadd.f32 %v914_v32, %v913_v34 }
 0x43c   :  { %v1004_v61 = vsel %vm259_vm1, %v1000_v25, 0.0 }
 0x43d   :  { %v1942_v33 = vpop.f32.mrf.mxu0  ;;  %v1005_v10 = vadd.f32 %v1004_v61, %v1003_v40 }
 0x43e   :  { %v916_v36 = vsel %vm259_vm1, %v1942_v33, 0.0  ;;  %v1001_v37 = vmul.f32 %v1942_v33, %v1942_v33 }
 0x43f   :  { %v906_v38 = vpop.f32.mrf.mxu0  ;;  %v917_v14 = vadd.f32 %v916_v36, %v915_v63 }
 0x440   :  { %v1006_v41 = vsel %vm259_vm1, %v1001_v37, 0.0 }
 0x441   :  { %v909_v39 = vpop.f32.mrf.mxu0  ;;  %v1007_v17 = vadd.f32 %v1006_v41, %v1005_v10 }
 0x442   :  { %v918_v7 = vsel %vm259_vm1, %v909_v39, 0.0  ;;  %v1002_v8 = vmul.f32 %v909_v39, %v909_v39 }
 0x443   :  { %v919_v11 = vadd.f32 %v918_v7, %v917_v14  ;;  %v911_v13 = vpop.f32.mrf.mxu0 }
 0x444   :  { %v1008_v15 = vsel %vm259_vm1, %v1002_v8, 0.0 }
 0x445   :  { %v920_v42 = vrot.slane %v919_v11, 4  ;;  %v1009_v44 = vadd.f32 %v1008_v15, %v1007_v17 }
 0x447   :  { %v921_v43 = vadd.f32 %v920_v42, %v919_v11  ;;  %v1010_v47 = vrot.slane %v1009_v44, 4 }
 0x449   :  { %v922_v45 = vrot.slane %v921_v43, 2  ;;  %v1011_v50 = vadd.f32 %v1010_v47, %v1009_v44 }
 0x44b   :  { %v923_v46 = vadd.f32 %v922_v45, %v921_v43  ;;  %v1012_v51 = vrot.slane %v1011_v50, 2 }
 0x44d   :  { %v924_v48 = vrot.slane %v923_v46, 1  ;;  %v1013_v52 = vadd.f32 %v1012_v51, %v1011_v50 }
 0x44f   :  { %v925_v49 = vadd.f32 %v924_v48, %v923_v46 }
 0x451   :  { %1353 = vmatmul.mubr.msk.f32.vlgmr.msra.gmra.mxu1 %vm259_vm1, %v925_v49 }
 0x452   :  { %1356 = vmatpush3.msra.mxu1 %v1676_v53  ;;  %1371 = vmatprep.mubr.msk.f32.mxu1 %vm1408_vm2, %v1407_v5  ;;  %v1014_v53 = vrot.slane %v1013_v52, 1 }
 0x453   :  { %1357 = vmatprep.subr.mxu1 %v1407_v5 }
 0x454   :  { %1358 = vmatpush3.msra.mxu1 %v1683_v54  ;;  %v1015_v54 = vadd.f32 %v1014_v53, %v1013_v52 }
 0x455   :  { %1359 = vmatprep.subr.mxu1 %v1407_v5 }
 0x456   :  { %1360 = vmatpush3.msra.mxu1 %v1690_v55 }
 0x457   :  { %1361 = vmatprep.subr.mxu1 %v1407_v5 }
 0x458   :  { %1362 = vmatpush3.msra.mxu1 %v1697_v56 }
 0x459   :  { %1363 = vmatprep.subr.mxu1 %v1407_v5 }
 0x45a   :  { %1364 = vmatpush3.msra.mxu1 %v1704_v57 }
 0x45b   :  { %1365 = vmatprep.subr.mxu1 %v1407_v5 }
 0x45c   :  { %1366 = vmatpush3.msra.mxu1 %v1711_v58  ;;  %v1091_v58 = vld [vmem:[%s2006_s8] sm:$0x1]  ;;  %s1409_s8 = smov [#allocation2]  }
 0x45d   :  { %1367 = vmatprep.subr.mxu1 %v1407_v5  ;;  %s1135_s14 = sshll.u32 %s1409_s8, 4  ;;  %s1136_s14 = int_to_ptr.vmem [resolvable:$true] %s1135_s14 }
 0x45e   :  { %1368 = vmatpush3.msra.mxu1 %v1718_v59  ;;  %p1389_p1 = scmp.lt.s32.totalorder %s1136_s14, %s1136_s14 }
 0x45f   :  { %1369 = vmatprep.subr.mxu1 %v1407_v5  ;;  %v1095_v5 = vld [vmem:[%s2007_s9] sm:$0x1]  ;;  %s1384_s9 = scalar_lea.vmem %s1136_s14, 512 }
 0x460   :  { %1370 = vmatpush3.msra.mxu1 %v1725_v60  ;;  %p1385_p0 = scmp.ne.s32.totalorder %s1136_s14, %s1384_s9  ;;  %p1390_p2 = scmp.lt.s32.totalorder %s1384_s9, %s1384_s9 }
 0x461   :  { %1372 = vmatmul.mubr.msk.f32.vlgmr.msra.gmra.mxu1 %vm259_vm1, %v1015_v54 }
 0x462   :  { %p1391_p3 = por %p1390_p2, %p1389_p1 }
 0x464   :  { %p1392_p4 = pnand %p1391_p3, %p1385_p0 }
 0x511   :  { %v995_v55 = vpop.f32.mrf.mxu1 }
 0x512   :  { %v1089_v62 = vmul.f32 %v995_v55, %v995_v55 }
 0x513   :  { %v1354_v56 = vpop.f32.mrf.mxu1 }
 0x521   :  { %v1085_v57 = vpop.f32.mrf.mxu1 }
 0x522   :  { %v1090_v6 = vsub.f32 %v1085_v57, %v1089_v62 }
 0x523   :  { %v1373_v9 = vpop.f32.mrf.mxu1 }
 0x524   :  { %v1092_v12 = vadd.f32 1e-05, %v1090_v6 }
 0x526   :  { %1382 = vrsqrt.f32 %v1092_v12 }
 0x533   :  { %v1383_v59 = vpop.eup %1382 }
 0x534   :  { %v1094_v16 = vmul.f32 %v1383_v59, %v1091_v58 }
 0x536   :  { %v1096_v60 = vmul.f32 %v1094_v16, %v995_v55  ;;  %v1102_v19 = vrot.slane %v1094_v16, %v1783_v18 }
 0x538   :  { %v1097_v20 = vsub.f32 %v1095_v5, %v1096_v60  ;;  %v1104_v2 = vmul.f32 %v1102_v19, %v1934_v28  ;;  %v1105_v22 = vmul.f32 %v1102_v19, %v1936_v30  ;;  %v1106_v23 = vmul.f32 %v1102_v19, %v1942_v33 }
 0x539   :  { %v1107_v24 = vmul.f32 %v1102_v19, %v909_v39 }
 0x53a   :  { %v1112_v21 = vrot.slane %v1097_v20, %v1783_v18 }
 0x53c   :  { %v1114_v26 = vadd.f32 %v1112_v21, %v1104_v2  ;;  %v1115_v27 = vadd.f32 %v1112_v21, %v1105_v22  ;;  %v1116_v29 = vadd.f32 %v1112_v21, %v1106_v23  ;;  %v1117_v31 = vadd.f32 %v1112_v21, %v1107_v24 }
 0x53e   :  { %v1118_v32 = vadd.f32 %v1114_v26, %v1494_v4  ;;  %v1119_v25 = vadd.f32 %v1115_v27, %v1489_v3  ;;  %v1120_v34 = vadd.f32 %v1116_v29, %v1475_v1  ;;  %v1121_v28 = vadd.f32 %v1117_v31, %v1470_v0 }
 0x540   :  { %v1122_v18 = vmax.f32 %v1118_v32, 0.0  ;;  %v1123_v35 = vmax.f32 %v1119_v25, 0.0  ;;  %v1124_v30 = vmax.f32 %v1120_v34, 0.0  ;;  %v1125_v36 = vmax.f32 %v1121_v28, 0.0 }
 0x542   :  { %1126 = vst.msk [vmem:[#allocation2] sm:$0xff] %vm259_vm1, %v1122_v18  ;;  %1127 = vst.msk [vmem:[#allocation2 + $0x8] sm:$0xff] %vm259_vm1, %v1123_v35 }
 0x543   :  { %1128 = vst.msk [vmem:[#allocation2 + $0x10] sm:$0xff] %vm259_vm1, %v1124_v30  ;;  %1129 = vst.msk [vmem:[#allocation2 + $0x18] sm:$0xff] %vm259_vm1, %v1125_v36 }
 0x544   :  { %1395 = shalt.err (!%p1392_p4)
}
 0x545   :  { %s1410_s15 = smov 128   ;;  %s1411_s16 = smov 8  }
 0x546   :  { %1141 = dma.vmem_to_hbm [thread:$0]  %s1136_s14, 512, %s2008_s10, [#allocation3], %s1410_s15, %s1410_s15, %s1411_s16  }
 0x547   :  { %1404 = dma.done.wait [#allocation3], 512  }
 0x548   :  { %1405 = vsyncadd [#allocation3], 4294966784 }
 0x549   :  { %1145 = vsyncpa [#allocation3], 1 }

</bundles_post_ra>
